<compile_context>
chip_gen: v6e
topology: v6e:2x2x1
jax: 0.10.0
libtpu: 0.0.40
codegen_flags: <defaults>
</compile_context>

<pallas_src>
import functools

import numpy as np
import jax
import jax.numpy as jnp
from jax.experimental import pallas as pl
from jax.experimental.pallas import tpu as pltpu


def _round_up(x, m):
    return ((x + m - 1) // m) * m


# ----------------------------------------------------------------------------- matmul
def _matmul_bias_kernel(x_ref, w_ref, b_ref, o_ref):
    acc = jnp.dot(x_ref[...], w_ref[...], preferred_element_type=jnp.float32)
    o_ref[...] = (acc + b_ref[...]).astype(o_ref.dtype)


def linear_pallas(x, w, b, *, tile_m=512):
    """x: [M, K], w: [K, N], b: [N] -> [M, N] (f32 accumulation on the MXU)."""
    M, K = x.shape
    N = w.shape[1]
    # Lane-dense output: pad the feature dim up to a multiple of 128.
    Np = _round_up(N, 128)
    if Np != N:
        w = jnp.pad(w, ((0, 0), (0, Np - N)))
        b = jnp.pad(b, (0, Np - N))
    b2 = b.reshape(1, Np)
    # Row tile: big enough to amortize per-step overhead, small enough for v7x VMEM.
    tm = min(tile_m, _round_up(M, 8))
    Mp = _round_up(M, tm)
    x_p = x if Mp == M else jnp.pad(x, ((0, Mp - M), (0, 0)))

    out = pl.pallas_call(
        _matmul_bias_kernel,
        out_shape=jax.ShapeDtypeStruct((Mp, Np), x.dtype),
        grid=(Mp // tm,),
        in_specs=[
            pl.BlockSpec((tm, K), lambda i: (i, 0)),
            pl.BlockSpec((K, Np), lambda i: (0, 0)),
            pl.BlockSpec((1, Np), lambda i: (0, 0)),
        ],
        out_specs=pl.BlockSpec((tm, Np), lambda i: (i, 0)),
        compiler_params=pltpu.CompilerParams(
            dimension_semantics=("parallel",),
            vmem_limit_bytes=32 * 1024 * 1024,
        ),
        cost_estimate=pl.CostEstimate(
            flops=2 * Mp * K * Np,
            transcendentals=0,
            bytes_accessed=4 * (Mp * K + K * Np + Np + Mp * Np),
        ),
    )(x_p, w, b2)
    return out[:M, :N]


# -------------------------------------------------------------------------- layernorm
def _layernorm_kernel(x_ref, g_ref, b_ref, o_ref):
    x = x_ref[...].astype(jnp.float32)
    mean = jnp.mean(x, axis=-1, keepdims=True)
    xc = x - mean
    var = jnp.mean(xc * xc, axis=-1, keepdims=True)
    inv = jax.lax.rsqrt(var + 1e-5)
    o_ref[...] = (xc * inv * g_ref[...] + b_ref[...]).astype(o_ref.dtype)


def layernorm_pallas(x, gamma, beta, *, tile_m=1024):
    """x: [M, C] -> LayerNorm over C (eps=1e-5, matches nn.LayerNorm)."""
    M, C = x.shape
    tm = min(tile_m, _round_up(M, 8))
    Mp = _round_up(M, tm)
    x_p = x if Mp == M else jnp.pad(x, ((0, Mp - M), (0, 0)))
    out = pl.pallas_call(
        _layernorm_kernel,
        out_shape=jax.ShapeDtypeStruct((Mp, C), x.dtype),
        grid=(Mp // tm,),
        in_specs=[
            pl.BlockSpec((tm, C), lambda i: (i, 0)),
            pl.BlockSpec((1, C), lambda i: (0, 0)),
            pl.BlockSpec((1, C), lambda i: (0, 0)),
        ],
        out_specs=pl.BlockSpec((tm, C), lambda i: (i, 0)),
        compiler_params=pltpu.CompilerParams(
            dimension_semantics=("parallel",),
            vmem_limit_bytes=32 * 1024 * 1024,
        ),
    )(x_p, gamma.reshape(1, C), beta.reshape(1, C))
    return out[:M]


# ------------------------------------------------------------------- window attention
def _window_attn_kernel(q_ref, k_ref, v_ref, bias_ref, mask_ref, o_ref, *, scale):
    # blocks: q/k/v/o (1, nh, N, hd); bias (nh, N, N); mask (1, N, N)
    q = q_ref[0].astype(jnp.float32)
    k = k_ref[0].astype(jnp.float32)
    v = v_ref[0]
    s = jnp.einsum("hnd,hmd->hnm", q, k, preferred_element_type=jnp.float32)
    s = s * scale + bias_ref[...] + mask_ref[...]          # (nh,N,N) + (1,N,N) bcast
    s = s - jnp.max(s, axis=-1, keepdims=True)
    p = jnp.exp(s)
    p = p / jnp.sum(p, axis=-1, keepdims=True)
    o = jnp.einsum("hnm,hmd->hnd", p.astype(v.dtype), v,
                   preferred_element_type=jnp.float32)
    o_ref[0] = o.astype(o_ref.dtype)


def window_attention_pallas(q, k, v, rel_bias, mask, scale):
    """q,k,v: (B_, nh, N, hd); rel_bias: (nh, N, N); mask: (B_, N, N)."""
    B_, nh, N, hd = q.shape
    kernel = functools.partial(_window_attn_kernel, scale=scale)
    return pl.pallas_call(
        kernel,
        out_shape=jax.ShapeDtypeStruct((B_, nh, N, hd), q.dtype),
        grid=(B_,),
        in_specs=[
            pl.BlockSpec((1, nh, N, hd), lambda i: (i, 0, 0, 0)),
            pl.BlockSpec((1, nh, N, hd), lambda i: (i, 0, 0, 0)),
            pl.BlockSpec((1, nh, N, hd), lambda i: (i, 0, 0, 0)),
            pl.BlockSpec((nh, N, N), lambda i: (0, 0, 0)),
            pl.BlockSpec((1, N, N), lambda i: (i, 0, 0)),
        ],
        out_specs=pl.BlockSpec((1, nh, N, hd), lambda i: (i, 0, 0, 0)),
        compiler_params=pltpu.CompilerParams(
            dimension_semantics=("parallel",),
            vmem_limit_bytes=32 * 1024 * 1024,
        ),
        cost_estimate=pl.CostEstimate(
            flops=4 * B_ * nh * N * N * hd,
            transcendentals=B_ * nh * N * N,
            bytes_accessed=4 * (4 * B_ * nh * N * hd + nh * N * N + B_ * N * N),
        ),
    )(q, k, v, rel_bias, mask)


# --------------------------------------------------------------- pure-JAX reference ops
def _linear_ref(x, w, b):
    return x @ w + b


def _layernorm_ref(x, g, b):
    m = jnp.mean(x, axis=-1, keepdims=True)
    xc = x - m
    v = jnp.mean(xc * xc, axis=-1, keepdims=True)
    return xc * jax.lax.rsqrt(v + 1e-5) * g + b


def _window_attention_ref(q, k, v, rel_bias, mask, scale):
    s = jnp.einsum("bhnd,bhmd->bhnm", q, k) * scale
    s = s + rel_bias[None, :, :, :] + mask[:, None, :, :]
    s = s - jnp.max(s, axis=-1, keepdims=True)
    p = jnp.exp(s)
    p = p / jnp.sum(p, axis=-1, keepdims=True)
    return jnp.einsum("bhnm,bhmd->bhnd", p, v)


# ---------------------------------------------------------------------- layout helpers
def window_partition(x, ws):
    B, H, W, C = x.shape
    x = x.reshape(B, H // ws, ws, W // ws, ws, C).transpose(0, 1, 3, 2, 4, 5)
    return x.reshape(-1, ws, ws, C)


def window_reverse(windows, ws, H, W):
    B = windows.shape[0] // ((H // ws) * (W // ws))
    x = windows.reshape(B, H // ws, W // ws, ws, ws, -1).transpose(0, 1, 3, 2, 4, 5)
    return x.reshape(B, H, W, -1)


def compute_attn_mask(H, W, ws, shift):
    """Shifted-window attention mask, (nW, ws*ws, ws*ws) with 0 / -100."""
    Hp = int(np.ceil(H / ws)) * ws
    Wp = int(np.ceil(W / ws)) * ws
    img_mask = np.zeros((1, Hp, Wp, 1), dtype=np.float32)
    h_slices = (slice(0, -ws), slice(-ws, -shift), slice(-shift, None))
    w_slices = (slice(0, -ws), slice(-ws, -shift), slice(-shift, None))
    cnt = 0
    for h in h_slices:
        for w in w_slices:
            img_mask[:, h, w, :] = cnt
            cnt += 1
    mask_windows = window_partition(img_mask, ws).reshape(-1, ws * ws)
    attn_mask = mask_windows[:, None, :] - mask_windows[:, :, None]
    attn_mask = np.where(attn_mask != 0, -100.0, 0.0).astype(np.float32)
    return jnp.asarray(attn_mask)


def relative_position_bias(table, ws, num_heads):
    """table: ((2*ws-1)^2, nh) -> gathered bias (nh, N, N)."""
    coords = np.stack(np.meshgrid(np.arange(ws), np.arange(ws), indexing="ij"))
    coords_flat = coords.reshape(2, -1)
    rel = coords_flat[:, :, None] - coords_flat[:, None, :]
    rel = rel.transpose(1, 2, 0).astype(np.int64)
    rel[:, :, 0] += ws - 1
    rel[:, :, 1] += ws - 1
    rel[:, :, 0] *= 2 * ws - 1
    idx = rel.sum(-1).reshape(-1)
    N = ws * ws
    bias = table[idx].reshape(N, N, num_heads)
    return jnp.transpose(bias, (2, 0, 1))


# -------------------------------------------------------------------- Swin block / stage
def swin_block_forward(x, H, W, p, attn_mask, *, window_size, shift_size,
                       num_heads, use_pallas):
    linear = linear_pallas if use_pallas else _linear_ref
    layernorm = layernorm_pallas if use_pallas else _layernorm_ref
    attention = window_attention_pallas if use_pallas else _window_attention_ref

    B, L, C = x.shape
    ws = window_size
    nh = num_heads
    hd = C // nh
    scale = hd ** (-0.5)

    shortcut = x
    x = layernorm(x.reshape(B * L, C), p["norm1_g"], p["norm1_b"]).reshape(B, H, W, C)

    pad_r = (ws - W % ws) % ws
    pad_b = (ws - H % ws) % ws
    if pad_r or pad_b:
        x = jnp.pad(x, ((0, 0), (0, pad_b), (0, pad_r), (0, 0)))
    Hp, Wp = H + pad_b, W + pad_r
    nW = (Hp // ws) * (Wp // ws)
    N = ws * ws
    B_ = B * nW

    if shift_size > 0:
        x = jnp.roll(x, shift=(-shift_size, -shift_size), axis=(1, 2))
        mask = jnp.broadcast_to(attn_mask[None], (B, nW, N, N)).reshape(B_, N, N)
    else:
        mask = jnp.zeros((B_, N, N), jnp.float32)

    x_windows = window_partition(x, ws).reshape(B_, N, C)

    # qkv projection -> (3, B_, nh, N, hd)
    qkv = linear(x_windows.reshape(B_ * N, C), p["qkv_w"], p["qkv_b"])
    qkv = qkv.reshape(B_, N, 3, nh, hd).transpose(2, 0, 3, 1, 4)
    q, k, v = qkv[0], qkv[1], qkv[2]

    attn_out = attention(q, k, v, p["rel_bias"], mask, scale)        # (B_, nh, N, hd)
    attn_out = attn_out.transpose(0, 2, 1, 3).reshape(B_ * N, C)
    attn_out = linear(attn_out, p["proj_w"], p["proj_b"]).reshape(B_, N, C)

    x = window_reverse(attn_out.reshape(-1, ws, ws, C), ws, Hp, Wp)
    if shift_size > 0:
        x = jnp.roll(x, shift=(shift_size, shift_size), axis=(1, 2))
    if pad_r or pad_b:
        x = x[:, :H, :W, :]
    x = x.reshape(B, L, C)
    x = shortcut + x                        # drop_path = 0 -> identity

    # MLP with pre-norm residual
    y = layernorm(x.reshape(B * L, C), p["norm2_g"], p["norm2_b"])
    y = linear(y, p["fc1_w"], p["fc1_b"])
    # TODO(synk): exact erf GELU (== nn.GELU default) applied in the wrapper rather
    #             than fused into the fc1 kernel.
    y = jax.nn.gelu(y, approximate=False)
    y = linear(y, p["fc2_w"], p["fc2_b"])
    x = x + y.reshape(B, L, C)
    return x


def basic_layer_forward(x, H, W, params, *, window_size, num_heads, use_pallas=True):
    shift = window_size // 2
    attn_mask = compute_attn_mask(H, W, window_size, shift)
    for i, p in enumerate(params):
        shift_size = 0 if i % 2 == 0 else shift
        x = swin_block_forward(x, H, W, p, attn_mask,
                               window_size=window_size, shift_size=shift_size,
                               num_heads=num_heads, use_pallas=use_pallas)
    # downsample is None -> return (x, H, W, x, H, W) as in the module
    return x, H, W, x, H, W


# -------------------------------------------------------------------------- parameters
def init_basic_layer_params(key, dim, depth, num_heads, window_size, mlp_ratio=4.0):
    hidden = int(dim * mlp_ratio)
    params = []
    for _ in range(depth):
        keys = jax.random.split(key, 14)
        key, ks = keys[0], keys[1:]
        p = {
            "norm1_g": 1.0 + 0.1 * jax.random.normal(ks[0], (dim,), jnp.float32),
            "norm1_b": 0.1 * jax.random.normal(ks[1], (dim,), jnp.float32),
            "qkv_w": 0.1 * jax.random.normal(ks[2], (dim, 3 * dim), jnp.float32),
            "qkv_b": 0.02 * jax.random.normal(ks[3], (3 * dim,), jnp.float32),
            "proj_w": 0.1 * jax.random.normal(ks[4], (dim, dim), jnp.float32),
            "proj_b": 0.02 * jax.random.normal(ks[5], (dim,), jnp.float32),
            "norm2_g": 1.0 + 0.1 * jax.random.normal(ks[6], (dim,), jnp.float32),
            "norm2_b": 0.1 * jax.random.normal(ks[7], (dim,), jnp.float32),
            "fc1_w": 0.1 * jax.random.normal(ks[8], (dim, hidden), jnp.float32),
            "fc1_b": 0.02 * jax.random.normal(ks[9], (hidden,), jnp.float32),
            "fc2_w": 0.1 * jax.random.normal(ks[10], (hidden, dim), jnp.float32),
            "fc2_b": 0.02 * jax.random.normal(ks[11], (dim,), jnp.float32),
        }
        table = 0.02 * jax.random.normal(
            ks[12], ((2 * window_size - 1) ** 2, num_heads), jnp.float32)
        p["rel_bias"] = relative_position_bias(table, window_size, num_heads)
        params.append(p)
    return params


if __name__ == "__main__":
    # Small shapes consistent with BasicLayer: B=2, dim=32, H=W=8, window=4, heads=4, depth=2
    B, dim, H, W = 2, 32, 8, 8
    depth, num_heads, window_size = 2, 4, 4
    L = H * W

    key = jax.random.PRNGKey(0)
    kx, kp = jax.random.split(key)
    x = jax.random.normal(kx, (B, L, dim), dtype=jnp.float32)
    params = init_basic_layer_params(kp, dim, depth, num_heads, window_size)

    out = basic_layer_forward(x, H, W, params, window_size=window_size,
                              num_heads=num_heads, use_pallas=True)
    out_x = jax.block_until_ready(out[0])

    # Pure-JAX reference (same math, jnp primitives instead of Pallas kernels)
    ref = basic_layer_forward(x, H, W, params, window_size=window_size,
                              num_heads=num_heads, use_pallas=False)[0]

    assert out_x.shape == (B, L, dim)
    max_err = float(jnp.max(jnp.abs(out_x - ref)))
    assert jnp.allclose(out_x, ref, atol=1e-3, rtol=1e-3), max_err

    print("KERNEL_OK")
</pallas_src>

<mosaic_0001>
module attributes {stable_mosaic.version = 11 : i64} {
  func.func @_layernorm_kernel(%arg0: i32, %arg1: memref<128x32xf32, #tpu.memory_space<vmem>>, %arg2: memref<1x32xf32, #tpu.memory_space<vmem>>, %arg3: memref<1x32xf32, #tpu.memory_space<vmem>>, %arg4: memref<128x32xf32, #tpu.memory_space<vmem>>) attributes {dimension_semantics = [#tpu.dimension_semantics<parallel>], iteration_bounds = array<i64: 1>, scalar_prefetch = 0 : i64, scratch_operands = 0 : i64, tpu.core_type = #tpu.core_type<tc>, window_params = [{transform_indices = @transform_0, window_bounds = array<i64: 128, 32>}, {pipeline_mode = #tpu.pipeline_mode<synchronous>, transform_indices = @transform_1, window_bounds = array<i64: 1, 32>}, {pipeline_mode = #tpu.pipeline_mode<synchronous>, transform_indices = @transform_2, window_bounds = array<i64: 1, 32>}, {transform_indices = @transform_3, window_bounds = array<i64: 128, 32>}]} {
    %c0 = arith.constant 0 : index
    %c0_0 = arith.constant 0 : index
    %0 = vector.load %arg1[%c0, %c0_0] : memref<128x32xf32, #tpu.memory_space<vmem>>, vector<128x32xf32>
    %cst = arith.constant dense<0.000000e+00> : vector<128xf32>
    %1 = vector.multi_reduction <add>, %0, %cst [1] : vector<128x32xf32> to vector<128xf32>
    %2 = vector.shape_cast %1 : vector<128xf32> to vector<128x1xf32>
    %cst_1 = arith.constant 3.200000e+01 : f32
    %3 = vector.broadcast %cst_1 : f32 to vector<128x1xf32>
    %4 = arith.divf %2, %3 : vector<128x1xf32>
    %5 = vector.broadcast %4 : vector<128x1xf32> to vector<128x32xf32>
    %6 = arith.subf %0, %5 : vector<128x32xf32>
    %7 = arith.mulf %6, %6 : vector<128x32xf32>
    %cst_2 = arith.constant dense<0.000000e+00> : vector<128xf32>
    %8 = vector.multi_reduction <add>, %7, %cst_2 [1] : vector<128x32xf32> to vector<128xf32>
    %9 = vector.shape_cast %8 : vector<128xf32> to vector<128x1xf32>
    %cst_3 = arith.constant 3.200000e+01 : f32
    %10 = vector.broadcast %cst_3 : f32 to vector<128x1xf32>
    %11 = arith.divf %9, %10 : vector<128x1xf32>
    %cst_4 = arith.constant 9.99999974E-6 : f32
    %12 = vector.broadcast %cst_4 : f32 to vector<128x1xf32>
    %13 = arith.addf %11, %12 : vector<128x1xf32>
    %14 = math.rsqrt %13 : vector<128x1xf32>
    %15 = vector.broadcast %14 : vector<128x1xf32> to vector<128x32xf32>
    %16 = arith.mulf %6, %15 : vector<128x32xf32>
    %c0_5 = arith.constant 0 : index
    %c0_6 = arith.constant 0 : index
    %17 = vector.load %arg2[%c0_5, %c0_6] : memref<1x32xf32, #tpu.memory_space<vmem>>, vector<1x32xf32>
    %18 = vector.broadcast %17 : vector<1x32xf32> to vector<128x32xf32>
    %19 = arith.mulf %16, %18 : vector<128x32xf32>
    %c0_7 = arith.constant 0 : index
    %c0_8 = arith.constant 0 : index
    %20 = vector.load %arg3[%c0_7, %c0_8] : memref<1x32xf32, #tpu.memory_space<vmem>>, vector<1x32xf32>
    %21 = vector.broadcast %20 : vector<1x32xf32> to vector<128x32xf32>
    %22 = arith.addf %19, %21 : vector<128x32xf32>
    %c0_9 = arith.constant 0 : index
    %c0_10 = arith.constant 0 : index
    %23 = vector.load %arg4[%c0_9, %c0_10] : memref<128x32xf32, #tpu.memory_space<vmem>>, vector<128x32xf32>
    tpu.vector_store %arg4[%c0_9, %c0_10], %22 {strides = array<i32>} : memref<128x32xf32, #tpu.memory_space<vmem>>, vector<128x32xf32>,
    return
  }
  func.func @transform_0(%arg0: i32) -> (i32, i32) {
    %c0_i32 = arith.constant 0 : i32
    %c0_i32_0 = arith.constant 0 : i32
    return %arg0, %c0_i32 : i32, i32
  }
  func.func @transform_1(%arg0: i32) -> (i32, i32) {
    %c0_i32 = arith.constant 0 : i32
    %c0_i32_0 = arith.constant 0 : i32
    %c0_i32_1 = arith.constant 0 : i32
    return %c0_i32, %c0_i32_0 : i32, i32
  }
  func.func @transform_2(%arg0: i32) -> (i32, i32) {
    %c0_i32 = arith.constant 0 : i32
    %c0_i32_0 = arith.constant 0 : i32
    %c0_i32_1 = arith.constant 0 : i32
    return %c0_i32, %c0_i32_0 : i32, i32
  }
  func.func @transform_3(%arg0: i32) -> (i32, i32) {
    %c0_i32 = arith.constant 0 : i32
    %c0_i32_0 = arith.constant 0 : i32
    return %arg0, %c0_i32 : i32, i32
  }
}

</mosaic_0001>

<bundles_post_ra>
// kernel: tpu_custom_call.1
= control target key start
LH: loop header
LB: loop body
LE: loop exit
PB: predicated region body
PF: predicated region fallthrough
CT: control target
= control target key end

     0   :  { %vm30_vm0 = vcmask 261120   ;;  %s666_s0 = inlined_call_operand.vmem [shape: f32[128,32], index: 0, kind: input, shape index: {}]   ;;  %s667_s1 = inlined_call_operand.vmem [shape: f32[1,32], index: 1, kind: input, shape index: {}]   ;;  %s668_s2 = inlined_call_operand.vmem [shape: f32[1,32], index: 2, kind: input, shape index: {}]   ;;  %s669_s3 = inlined_call_operand.vmem [shape: f32[128,32], index: 3, kind: output, shape index: {}]  }
   0x1   :  { %v14_v0 = vld [vmem:[%s666_s0] sm:$0xff]  ;;  %v16_v1 = vld [vmem:[%s666_s0 + $0x10] sm:$0xff]  ;;  %v15_v2 = vld [vmem:[%s666_s0 + $0x8] sm:$0xff] }
   0x2   :  { %v31_v3 = vsel %vm30_vm0, %v14_v0, 0.0  ;;  %v37_v4 = vsel %vm30_vm0, %v16_v1, 0.0  ;;  %v17_v5 = vld [vmem:[%s666_s0 + $0x18] sm:$0xff]  ;;  %v34_v6 = vsel %vm30_vm0, %v15_v2, 0.0  ;;  %v18_v8 = vld [vmem:[%s666_s0 + $0x20] sm:$0xff]  ;;  %v19_v9 = vld [vmem:[%s666_s0 + $0x28] sm:$0xff] }
   0x3   :  { %32 = vadd.xlane.f32.xlu0 %v31_v3  ;;  %38 = vadd.xlane.f32.xlu1 %v37_v4  ;;  %v40_v7 = vsel %vm30_vm0, %v17_v5, 0.0  ;;  %v43_v10 = vsel %vm30_vm0, %v18_v8, 0.0  ;;  %v46_v11 = vsel %vm30_vm0, %v19_v9, 0.0  ;;  %v387_v12 = vld [vmem:[%s666_s0 + $0x30] sm:$0xff]  ;;  %v392_v13 = vld [vmem:[%s666_s0 + $0x38] sm:$0xff]  ;;  %v401_v16 = vld [vmem:[%s666_s0 + $0x40] sm:$0xff] }
   0x4   :  { %v49_v14 = vsel %vm30_vm0, %v387_v12, 0.0  ;;  %v52_v15 = vsel %vm30_vm0, %v392_v13, 0.0  ;;  %v406_v17 = vld [vmem:[%s666_s0 + $0x48] sm:$0xff]  ;;  %v55_v18 = vsel %vm30_vm0, %v401_v16, 0.0  ;;  %v415_v20 = vld [vmem:[%s666_s0 + $0x50] sm:$0xff]  ;;  %v420_v21 = vld [vmem:[%s666_s0 + $0x58] sm:$0xff] }
   0x5   :  { %v58_v19 = vsel %vm30_vm0, %v406_v17, 0.0  ;;  %v61_v22 = vsel %vm30_vm0, %v415_v20, 0.0  ;;  %v64_v23 = vsel %vm30_vm0, %v420_v21, 0.0  ;;  %v429_v24 = vld [vmem:[%s666_s0 + $0x60] sm:$0xff]  ;;  %v434_v25 = vld [vmem:[%s666_s0 + $0x68] sm:$0xff]  ;;  %v443_v28 = vld [vmem:[%s666_s0 + $0x70] sm:$0xff] }
   0x6   :  { %v67_v26 = vsel %vm30_vm0, %v429_v24, 0.0  ;;  %v70_v27 = vsel %vm30_vm0, %v434_v25, 0.0  ;;  %v448_v29 = vld [vmem:[%s666_s0 + $0x78] sm:$0xff]  ;;  %v73_v30 = vsel %vm30_vm0, %v443_v28, 0.0 }
   0x7   :  { %35 = vadd.xlane.f32.xlu0 %v34_v6  ;;  %41 = vadd.xlane.f32.xlu1 %v40_v7  ;;  %v76_v31 = vsel %vm30_vm0, %v448_v29, 0.0 }
   0xb   :  { %44 = vadd.xlane.f32.xlu0 %v43_v10  ;;  %47 = vadd.xlane.f32.xlu1 %v46_v11 }
   0xf   :  { %50 = vadd.xlane.f32.xlu0 %v49_v14  ;;  %53 = vadd.xlane.f32.xlu1 %v52_v15 }
  0x13   :  { %56 = vadd.xlane.f32.xlu0 %v55_v18  ;;  %59 = vadd.xlane.f32.xlu1 %v58_v19 }
  0x17   :  { %62 = vadd.xlane.f32.xlu0 %v61_v22  ;;  %65 = vadd.xlane.f32.xlu1 %v64_v23 }
  0x1b   :  { %68 = vadd.xlane.f32.xlu0 %v67_v26  ;;  %71 = vadd.xlane.f32.xlu1 %v70_v27 }
  0x1f   :  { %74 = vadd.xlane.f32.xlu0 %v73_v30  ;;  %77 = vadd.xlane.f32.xlu1 %v76_v31 }
  0x8c   :  { %v33_v32 = vpop.xlane.xlu0 %32  ;;  %v39_v33 = vpop.xlane.xlu1 %38 }
  0x8d   :  { %v80_v34 = vmul.f32 0.03125, %v33_v32  ;;  %v82_v35 = vmul.f32 0.03125, %v39_v33 }
  0x8f   :  { %v454_v36 = vsub.f32 %v14_v0, %v80_v34  ;;  %v456_v37 = vsub.f32 %v16_v1, %v82_v35 }
  0x90   :  { %v36_v38 = vpop.xlane.xlu0 %35  ;;  %v42_v39 = vpop.xlane.xlu1 %41 }
  0x91   :  { %v81_v40 = vmul.f32 0.03125, %v36_v38  ;;  %v83_v41 = vmul.f32 0.03125, %v42_v39  ;;  %v112_v42 = vmul.f32 %v454_v36, %v454_v36  ;;  %v114_v43 = vmul.f32 %v456_v37, %v456_v37 }
  0x93   :  { %v462_v44 = vsub.f32 %v15_v2, %v81_v40  ;;  %v464_v45 = vsub.f32 %v17_v5, %v83_v41  ;;  %v128_v46 = vsel %vm30_vm0, %v112_v42, 0.0  ;;  %v134_v49 = vsel %vm30_vm0, %v114_v43, 0.0 }
  0x94   :  { %129 = vadd.xlane.f32.xlu0 %v128_v46  ;;  %v45_v47 = vpop.xlane.xlu0 %44  ;;  %v48_v48 = vpop.xlane.xlu1 %47 }
  0x95   :  { %v84_v50 = vmul.f32 0.03125, %v45_v47  ;;  %v85_v51 = vmul.f32 0.03125, %v48_v48  ;;  %v113_v52 = vmul.f32 %v462_v44, %v462_v44  ;;  %v115_v53 = vmul.f32 %v464_v45, %v464_v45 }
  0x97   :  { %v472_v54 = vsub.f32 %v18_v8, %v84_v50  ;;  %v474_v55 = vsub.f32 %v19_v9, %v85_v51  ;;  %v131_v56 = vsel %vm30_vm0, %v113_v52, 0.0  ;;  %v137_v59 = vsel %vm30_vm0, %v115_v53, 0.0 }
  0x98   :  { %135 = vadd.xlane.f32.xlu0 %v134_v49  ;;  %132 = vadd.xlane.f32.xlu1 %v131_v56  ;;  %v51_v57 = vpop.xlane.xlu0 %50  ;;  %v54_v58 = vpop.xlane.xlu1 %53 }
  0x99   :  { %v86_v60 = vmul.f32 0.03125, %v51_v57  ;;  %v87_v61 = vmul.f32 0.03125, %v54_v58  ;;  %v116_v62 = vmul.f32 %v472_v54, %v472_v54  ;;  %v117_v63 = vmul.f32 %v474_v55, %v474_v55 }
  0x9b   :  { %v483_v0 = vsub.f32 %v387_v12, %v86_v60  ;;  %v486_v1 = vsub.f32 %v392_v13, %v87_v61  ;;  %v140_v2 = vsel %vm30_vm0, %v116_v62, 0.0  ;;  %v143_v5 = vsel %vm30_vm0, %v117_v63, 0.0 }
  0x9c   :  { %138 = vadd.xlane.f32.xlu1 %v137_v59  ;;  %141 = vadd.xlane.f32.xlu0 %v140_v2  ;;  %v57_v3 = vpop.xlane.xlu0 %56  ;;  %v60_v4 = vpop.xlane.xlu1 %59 }
  0x9d   :  { %v88_v6 = vmul.f32 0.03125, %v57_v3  ;;  %v89_v7 = vmul.f32 0.03125, %v60_v4  ;;  %v118_v8 = vmul.f32 %v483_v0, %v483_v0  ;;  %v119_v9 = vmul.f32 %v486_v1, %v486_v1 }
  0x9f   :  { %v495_v10 = vsub.f32 %v401_v16, %v88_v6  ;;  %v498_v11 = vsub.f32 %v406_v17, %v89_v7  ;;  %v146_v12 = vsel %vm30_vm0, %v118_v8, 0.0  ;;  %v149_v15 = vsel %vm30_vm0, %v119_v9, 0.0 }
  0xa0   :  { %144 = vadd.xlane.f32.xlu1 %v143_v5  ;;  %147 = vadd.xlane.f32.xlu0 %v146_v12  ;;  %v63_v13 = vpop.xlane.xlu0 %62  ;;  %v66_v14 = vpop.xlane.xlu1 %65 }
  0xa1   :  { %v90_v18 = vmul.f32 0.03125, %v63_v13  ;;  %v91_v19 = vmul.f32 0.03125, %v66_v14  ;;  %v120_v22 = vmul.f32 %v495_v10, %v495_v10  ;;  %v121_v16 = vmul.f32 %v498_v11, %v498_v11 }
  0xa3   :  { %v507_v23 = vsub.f32 %v415_v20, %v90_v18  ;;  %v510_v17 = vsub.f32 %v420_v21, %v91_v19  ;;  %v152_v26 = vsel %vm30_vm0, %v120_v22, 0.0  ;;  %v155_v31 = vsel %vm30_vm0, %v121_v16, 0.0 }
  0xa4   :  { %150 = vadd.xlane.f32.xlu1 %v149_v15  ;;  %153 = vadd.xlane.f32.xlu0 %v152_v26  ;;  %v69_v27 = vpop.xlane.xlu0 %68  ;;  %v72_v30 = vpop.xlane.xlu1 %71  ;;  %v547_v26 = vld [vmem:[%s667_s1] ss:$0 sm:$0xff] }
  0xa5   :  { %v92_v32 = vmul.f32 0.03125, %v69_v27  ;;  %v93_v33 = vmul.f32 0.03125, %v72_v30  ;;  %v122_v34 = vmul.f32 %v507_v23, %v507_v23  ;;  %v123_v20 = vmul.f32 %v510_v17, %v510_v17 }
  0xa7   :  { %v519_v35 = vsub.f32 %v429_v24, %v92_v32  ;;  %v522_v21 = vsub.f32 %v434_v25, %v93_v33  ;;  %v158_v38 = vsel %vm30_vm0, %v122_v34, 0.0  ;;  %v161_v41 = vsel %vm30_vm0, %v123_v20, 0.0  ;;  %v553_v32 = vld [vmem:[%s668_s2] ss:$0 sm:$0xff] }
  0xa8   :  { %156 = vadd.xlane.f32.xlu1 %v155_v31  ;;  %159 = vadd.xlane.f32.xlu0 %v158_v38  ;;  %v75_v39 = vpop.xlane.xlu0 %74  ;;  %v78_v40 = vpop.xlane.xlu1 %77 }
  0xa9   :  { %v94_v42 = vmul.f32 0.03125, %v75_v39  ;;  %v95_v43 = vmul.f32 0.03125, %v78_v40  ;;  %v124_v46 = vmul.f32 %v519_v35, %v519_v35  ;;  %v125_v24 = vmul.f32 %v522_v21, %v522_v21 }
  0xab   :  { %v531_v47 = vsub.f32 %v443_v28, %v94_v42  ;;  %v534_v25 = vsub.f32 %v448_v29, %v95_v43  ;;  %v164_v48 = vsel %vm30_vm0, %v124_v46, 0.0  ;;  %v167_v49 = vsel %vm30_vm0, %v125_v24, 0.0 }
  0xac   :  { %162 = vadd.xlane.f32.xlu1 %v161_v41  ;;  %165 = vadd.xlane.f32.xlu0 %v164_v48 }
  0xad   :  { %v126_v50 = vmul.f32 %v531_v47, %v531_v47  ;;  %v127_v51 = vmul.f32 %v534_v25, %v534_v25 }
  0xaf   :  { %v170_v52 = vsel %vm30_vm0, %v126_v50, 0.0  ;;  %v173_v28 = vsel %vm30_vm0, %v127_v51, 0.0 }
  0xb0   :  { %168 = vadd.xlane.f32.xlu1 %v167_v49  ;;  %171 = vadd.xlane.f32.xlu0 %v170_v52 }
  0xb4   :  { %174 = vadd.xlane.f32.xlu1 %v173_v28 }
 0x11d   :  { %v130_v29 = vpop.xlane.xlu0 %129 }
 0x11e   :  { %v176_v53 = vmul.f32 0.03125, %v130_v29 }
 0x120   :  { %v192_v56 = vadd.f32 1e-05, %v176_v53 }
 0x121   :  { %v133_v57 = vpop.xlane.xlu1 %132  ;;  %v136_v58 = vpop.xlane.xlu0 %135 }
 0x122   :  { %308 = vrsqrt.f32 %v192_v56  ;;  %v177_v59 = vmul.f32 0.03125, %v133_v57  ;;  %v178_v60 = vmul.f32 0.03125, %v136_v58 }
 0x124   :  { %v193_v61 = vadd.f32 1e-05, %v177_v59  ;;  %v194_v62 = vadd.f32 1e-05, %v178_v60 }
 0x125   :  { %v139_v63 = vpop.xlane.xlu1 %138  ;;  %v142_v2 = vpop.xlane.xlu0 %141 }
 0x126   :  { %310 = vrsqrt.f32 %v193_v61  ;;  %v179_v3 = vmul.f32 0.03125, %v139_v63  ;;  %v180_v4 = vmul.f32 0.03125, %v142_v2 }
 0x127   :  { %312 = vrsqrt.f32 %v194_v62 }
 0x128   :  { %v195_v5 = vadd.f32 1e-05, %v179_v3  ;;  %v196_v6 = vadd.f32 1e-05, %v180_v4 }
 0x129   :  { %v145_v7 = vpop.xlane.xlu1 %144  ;;  %v148_v8 = vpop.xlane.xlu0 %147 }
 0x12a   :  { %314 = vrsqrt.f32 %v195_v5  ;;  %v181_v9 = vmul.f32 0.03125, %v145_v7  ;;  %v182_v12 = vmul.f32 0.03125, %v148_v8 }
 0x12b   :  { %316 = vrsqrt.f32 %v196_v6 }
 0x12c   :  { %v197_v13 = vadd.f32 1e-05, %v181_v9  ;;  %v198_v14 = vadd.f32 1e-05, %v182_v12 }
 0x12d   :  { %v151_v15 = vpop.xlane.xlu1 %150  ;;  %v154_v18 = vpop.xlane.xlu0 %153 }
 0x12e   :  { %318 = vrsqrt.f32 %v197_v13  ;;  %v183_v19 = vmul.f32 0.03125, %v151_v15  ;;  %v184_v22 = vmul.f32 0.03125, %v154_v18 }
 0x12f   :  { %v309_v16 = vpop.eup %308  ;;  %320 = vrsqrt.f32 %v198_v14 }
 0x130   :  { %v224_v27 = vmul.f32 %v309_v16, %v454_v36  ;;  %v199_v30 = vadd.f32 1e-05, %v183_v19  ;;  %v200_v31 = vadd.f32 1e-05, %v184_v22 }
 0x131   :  { %v157_v33 = vpop.xlane.xlu1 %156  ;;  %v160_v34 = vpop.xlane.xlu0 %159 }
 0x132   :  { %v247_v20 = vmul.f32 %v547_v26, %v224_v27  ;;  %322 = vrsqrt.f32 %v199_v30  ;;  %v185_v38 = vmul.f32 0.03125, %v157_v33  ;;  %v186_v39 = vmul.f32 0.03125, %v160_v34 }
 0x133   :  { %v311_v40 = vpop.eup %310  ;;  %324 = vrsqrt.f32 %v200_v31 }
 0x134   :  { %v313_v41 = vpop.eup %312  ;;  %v270_v42 = vadd.f32 %v553_v32, %v247_v20  ;;  %v225_v36 = vmul.f32 %v311_v40, %v462_v44  ;;  %v201_v43 = vadd.f32 1e-05, %v185_v38  ;;  %v202_v46 = vadd.f32 1e-05, %v186_v39 }
 0x135   :  { %v226_v24 = vmul.f32 %v313_v41, %v456_v37  ;;  %v163_v48 = vpop.xlane.xlu1 %162  ;;  %v166_v49 = vpop.xlane.xlu0 %165 }
 0x136   :  { %286 = vst.msk [vmem:[%s669_s3] sm:$0xff] %vm30_vm0, %v270_v42  ;;  %v248_v50 = vmul.f32 %v547_v26, %v225_v36  ;;  %326 = vrsqrt.f32 %v201_v43  ;;  %v187_v51 = vmul.f32 0.03125, %v163_v48  ;;  %v188_v52 = vmul.f32 0.03125, %v166_v49 }
 0x137   :  { %v315_v28 = vpop.eup %314  ;;  %v249_v29 = vmul.f32 %v547_v26, %v226_v24  ;;  %328 = vrsqrt.f32 %v202_v46 }
 0x138   :  { %v317_v44 = vpop.eup %316  ;;  %v271_v53 = vadd.f32 %v553_v32, %v248_v50  ;;  %v227_v37 = vmul.f32 %v315_v28, %v464_v45  ;;  %v203_v56 = vadd.f32 1e-05, %v187_v51  ;;  %v204_v57 = vadd.f32 1e-05, %v188_v52 }
 0x139   :  { %v272_v58 = vadd.f32 %v553_v32, %v249_v29  ;;  %v228_v59 = vmul.f32 %v317_v44, %v472_v54  ;;  %v169_v60 = vpop.xlane.xlu1 %168  ;;  %v172_v61 = vpop.xlane.xlu0 %171 }
 0x13a   :  { %287 = vst.msk [vmem:[%s669_s3 + $0x8] sm:$0xff] %vm30_vm0, %v271_v53  ;;  %v250_v62 = vmul.f32 %v547_v26, %v227_v37  ;;  %330 = vrsqrt.f32 %v203_v56  ;;  %v189_v63 = vmul.f32 0.03125, %v169_v60  ;;  %v190_v2 = vmul.f32 0.03125, %v172_v61 }
 0x13b   :  { %v319_v3 = vpop.eup %318  ;;  %288 = vst.msk [vmem:[%s669_s3 + $0x10] sm:$0xff] %vm30_vm0, %v272_v58  ;;  %v251_v45 = vmul.f32 %v547_v26, %v228_v59  ;;  %332 = vrsqrt.f32 %v204_v57 }
 0x13c   :  { %v321_v54 = vpop.eup %320  ;;  %v273_v4 = vadd.f32 %v553_v32, %v250_v62  ;;  %v229_v5 = vmul.f32 %v319_v3, %v474_v55  ;;  %v205_v6 = vadd.f32 1e-05, %v189_v63  ;;  %v206_v7 = vadd.f32 1e-05, %v190_v2 }
 0x13d   :  { %v274_v8 = vadd.f32 %v553_v32, %v251_v45  ;;  %v230_v9 = vmul.f32 %v321_v54, %v483_v0  ;;  %v175_v12 = vpop.xlane.xlu1 %174 }
 0x13e   :  { %289 = vst.msk [vmem:[%s669_s3 + $0x18] sm:$0xff] %vm30_vm0, %v273_v4  ;;  %v252_v13 = vmul.f32 %v547_v26, %v229_v5  ;;  %334 = vrsqrt.f32 %v205_v6  ;;  %v191_v14 = vmul.f32 0.03125, %v175_v12 }
 0x13f   :  { %v323_v15 = vpop.eup %322  ;;  %290 = vst.msk [vmem:[%s669_s3 + $0x20] sm:$0xff] %vm30_vm0, %v274_v8  ;;  %v253_v55 = vmul.f32 %v547_v26, %v230_v9  ;;  %336 = vrsqrt.f32 %v206_v7 }
 0x140   :  { %v325_v0 = vpop.eup %324  ;;  %v275_v18 = vadd.f32 %v553_v32, %v252_v13  ;;  %v231_v19 = vmul.f32 %v323_v15, %v486_v1  ;;  %v207_v22 = vadd.f32 1e-05, %v191_v14 }
 0x141   :  { %v276_v16 = vadd.f32 %v553_v32, %v253_v55  ;;  %v232_v27 = vmul.f32 %v325_v0, %v495_v10 }
 0x142   :  { %291 = vst.msk [vmem:[%s669_s3 + $0x28] sm:$0xff] %vm30_vm0, %v275_v18  ;;  %v254_v30 = vmul.f32 %v547_v26, %v231_v19  ;;  %338 = vrsqrt.f32 %v207_v22 }
 0x143   :  { %v327_v31 = vpop.eup %326  ;;  %292 = vst.msk [vmem:[%s669_s3 + $0x30] sm:$0xff] %vm30_vm0, %v276_v16  ;;  %v255_v1 = vmul.f32 %v547_v26, %v232_v27 }
 0x144   :  { %v329_v33 = vpop.eup %328  ;;  %v277_v34 = vadd.f32 %v553_v32, %v254_v30  ;;  %v233_v10 = vmul.f32 %v327_v31, %v498_v11 }
 0x145   :  { %v278_v20 = vadd.f32 %v553_v32, %v255_v1  ;;  %v234_v38 = vmul.f32 %v329_v33, %v507_v23 }
 0x146   :  { %293 = vst.msk [vmem:[%s669_s3 + $0x38] sm:$0xff] %vm30_vm0, %v277_v34  ;;  %v256_v39 = vmul.f32 %v547_v26, %v233_v10 }
 0x147   :  { %v331_v40 = vpop.eup %330  ;;  %294 = vst.msk [vmem:[%s669_s3 + $0x40] sm:$0xff] %vm30_vm0, %v278_v20  ;;  %v257_v41 = vmul.f32 %v547_v26, %v234_v38 }
 0x148   :  { %v333_v11 = vpop.eup %332  ;;  %v279_v42 = vadd.f32 %v553_v32, %v256_v39  ;;  %v235_v23 = vmul.f32 %v331_v40, %v510_v17 }
 0x149   :  { %v280_v36 = vadd.f32 %v553_v32, %v257_v41  ;;  %v236_v43 = vmul.f32 %v333_v11, %v519_v35 }
 0x14a   :  { %295 = vst.msk [vmem:[%s669_s3 + $0x48] sm:$0xff] %vm30_vm0, %v279_v42  ;;  %v258_v46 = vmul.f32 %v547_v26, %v235_v23 }
 0x14b   :  { %v335_v24 = vpop.eup %334  ;;  %296 = vst.msk [vmem:[%s669_s3 + $0x50] sm:$0xff] %vm30_vm0, %v280_v36  ;;  %v259_v48 = vmul.f32 %v547_v26, %v236_v43 }
 0x14c   :  { %v337_v17 = vpop.eup %336  ;;  %v281_v49 = vadd.f32 %v553_v32, %v258_v46  ;;  %v237_v35 = vmul.f32 %v335_v24, %v522_v21 }
 0x14d   :  { %v282_v50 = vadd.f32 %v553_v32, %v259_v48  ;;  %v238_v51 = vmul.f32 %v337_v17, %v531_v47 }
 0x14e   :  { %297 = vst.msk [vmem:[%s669_s3 + $0x58] sm:$0xff] %vm30_vm0, %v281_v49  ;;  %v260_v52 = vmul.f32 %v547_v26, %v237_v35 }
 0x14f   :  { %v339_v28 = vpop.eup %338  ;;  %298 = vst.msk [vmem:[%s669_s3 + $0x60] sm:$0xff] %vm30_vm0, %v282_v50  ;;  %v261_v29 = vmul.f32 %v547_v26, %v238_v51 }
 0x150   :  { %v283_v21 = vadd.f32 %v553_v32, %v260_v52  ;;  %v239_v44 = vmul.f32 %v339_v28, %v534_v25 }
 0x151   :  { %v284_v47 = vadd.f32 %v553_v32, %v261_v29 }
 0x152   :  { %299 = vst.msk [vmem:[%s669_s3 + $0x68] sm:$0xff] %vm30_vm0, %v283_v21  ;;  %v262_v53 = vmul.f32 %v547_v26, %v239_v44 }
 0x153   :  { %300 = vst.msk [vmem:[%s669_s3 + $0x70] sm:$0xff] %vm30_vm0, %v284_v47 }
 0x154   :  { %v285_v37 = vadd.f32 %v553_v32, %v262_v53 }
 0x156   :  { %301 = vst.msk [vmem:[%s669_s3 + $0x78] sm:$0xff] %vm30_vm0, %v285_v37 }

</bundles_post_ra>
